<compile_context>
chip_gen: v5e
topology: v5e:2x2
jax: 0.10.0
libtpu: 0.0.40
codegen_flags: <defaults>
</compile_context>

<pallas_src>
import functools

import jax
import jax.numpy as jnp
import numpy as np
from jax.experimental import pallas as pl
from jax.experimental.pallas import tpu as pltpu


# ----------------------------------------------------------------------------
# Kernel bodies
# ----------------------------------------------------------------------------
def _mlp_q(x_ref, w1_ref, b1_ref, w2_ref, b2_ref, w3_ref, b3_ref,
           w4_ref, b4_ref, activation_dtype):
    """Fused 4-layer MLP; returns the (TB, n_actions) Q tile in float32."""
    cdt = w1_ref.dtype            # MXU operand dtype (bf16 default, or f32)
    act_dt = activation_dtype     # dtype the tanh runs in (f32 default)

    # Cast x in-kernel (VPU, hidden under the MXU pushes).
    h = x_ref[...].astype(cdt)
    # Layer 1: (TB, F) @ (F, 64) + b -> tanh
    h = jnp.tanh((jnp.dot(h, w1_ref[...], preferred_element_type=jnp.float32)
                  + b1_ref[...]).astype(act_dt)).astype(cdt)
    # Layer 2: (TB, 64) @ (64, 128) + b -> tanh
    h = jnp.tanh((jnp.dot(h, w2_ref[...], preferred_element_type=jnp.float32)
                  + b2_ref[...]).astype(act_dt)).astype(cdt)
    # Layer 3: (TB, 128) @ (128, 64) + b -> tanh
    h = jnp.tanh((jnp.dot(h, w3_ref[...], preferred_element_type=jnp.float32)
                  + b3_ref[...]).astype(act_dt)).astype(cdt)
    # Output head: (TB, 64) @ (64, A) + b   (raw Q-values, f32)
    return (jnp.dot(h, w4_ref[...], preferred_element_type=jnp.float32)
            + b4_ref[...])


def _mlp_kernel(x_ref, w1_ref, b1_ref, w2_ref, b2_ref, w3_ref, b3_ref,
                w4_ref, b4_ref, o_ref, *, activation_dtype):
    q = _mlp_q(x_ref, w1_ref, b1_ref, w2_ref, b2_ref, w3_ref, b3_ref,
               w4_ref, b4_ref, activation_dtype)
    o_ref[...] = q.astype(o_ref.dtype)


def _mlp_argmax_kernel(x_ref, w1_ref, b1_ref, w2_ref, b2_ref, w3_ref, b3_ref,
                       w4_ref, b4_ref, a_ref, *, activation_dtype):
    """Forward pass with the greedy argmax fused into the epilogue (act path)."""
    q = _mlp_q(x_ref, w1_ref, b1_ref, w2_ref, b2_ref, w3_ref, b3_ref,
               w4_ref, b4_ref, activation_dtype)                 # (TB, A) f32
    n_act = q.shape[-1]
    max_q = jnp.max(q, axis=-1, keepdims=True)
    lane = jax.lax.broadcasted_iota(jnp.int32, q.shape, 1)
    # First index achieving the max (matches torch.argmax tie-breaking).
    a_ref[...] = jnp.min(jnp.where(q == max_q, lane, n_act),
                         axis=-1, keepdims=True)


# ----------------------------------------------------------------------------
# Wrapper
# ----------------------------------------------------------------------------
def _round_up(n, m):
    return ((n + m - 1) // m) * m


_AUTO_TILE_CAP = 1024   # rows per tile; VMEM use at this cap is only a few MB


def _pick_batch_tile(B, batch_tile):
    if batch_tile is not None:
        # Clamp so we never pad past round_up(B, 8); keep multiples of 8 when
        # actually tiling (sublane constraint).
        bt = min(int(batch_tile), _round_up(B, 8))
        if bt < B:
            bt = max(8, (bt // 8) * 8)
        return bt
    if B <= _AUTO_TILE_CAP:
        # >= 2 grid steps once there is enough work so a 2-TC chip (v7x) can
        # split the "parallel" batch axis; below that the extra ~0.35us grid
        # step isn't worth it (single-TC v5e/v6e prefer one big tile).
        n_tiles = 2 if B >= 512 else 1
    else:
        n_tiles = pl.cdiv(B, _AUTO_TILE_CAP)
        n_tiles += n_tiles % 2          # even tile count keeps 2 TCs balanced
    if n_tiles == 1:
        return B                        # single block == full array, no padding
    return _round_up(pl.cdiv(B, n_tiles), 8)


def prepare_params(params, compute_dtype=jnp.bfloat16):
    """One-time packing of PyTorch-layout params for the kernel.

    Transposes weights to (in, out), casts the MXU operands to `compute_dtype`
    and reshapes biases to (1, out) float32 -- done ONCE here so brain_forward
    emits no per-call transpose/cast ops.

    bfloat16 is the recommended compute dtype on every TPU generation
    (v5e/v6e/v7x MXUs are all bf16-native); use jnp.float32 only for
    strict-f32 parity debugging.  Accumulation, bias adds and tanh are always
    float32 inside the kernel.
    """
    prep = {}
    for i in range(1, 5):
        prep[f"w{i}t"] = jnp.asarray(params[f"w{i}"]).T.astype(compute_dtype)
        prep[f"b{i}"] = jnp.asarray(params[f"b{i}"], jnp.float32)[None, :]
    return prep


def _run(x, prep, *, batch_tile=None, want_argmax=False,
         activation_dtype=jnp.float32):
    B, F = x.shape
    n_actions = prep["w4t"].shape[1]

    bt = _pick_batch_tile(B, batch_tile)
    grid_b = pl.cdiv(B, bt)
    B_pad = grid_b * bt
    if B_pad != B:
        # Tile choice above keeps this to at most a handful of rows.
        x = jnp.pad(x, ((0, B_pad - B), (0, 0)))

    def const_block(arr):
        # Whole array as one block with a constant block index => Pallas does
        # not re-DMA it on later grid steps (weights stay resident in VMEM).
        return pl.BlockSpec(arr.shape, lambda i: (0, 0))

    if want_argmax:
        kernel = functools.partial(_mlp_argmax_kernel,
                                   activation_dtype=activation_dtype)
        out_shape = jax.ShapeDtypeStruct((B_pad, 1), jnp.int32)
        out_spec = pl.BlockSpec((bt, 1), lambda i: (i, 0))
    else:
        kernel = functools.partial(_mlp_kernel,
                                   activation_dtype=activation_dtype)
        out_shape = jax.ShapeDtypeStruct((B_pad, n_actions), jnp.float32)
        out_spec = pl.BlockSpec((bt, n_actions), lambda i: (i, 0))

    # Advisory cost hint so XLA schedules this latency-bound call sensibly.
    mac_per_row = F * 64 + 64 * 128 + 128 * 64 + 64 * n_actions
    weight_bytes = sum(int(np.prod(a.shape)) * a.dtype.itemsize
                       for a in prep.values())
    cost = pl.CostEstimate(
        flops=int(2 * B_pad * mac_per_row),
        transcendentals=int(B_pad * (64 + 128 + 64)),
        bytes_accessed=int(B_pad * F * x.dtype.itemsize
                           + B_pad * out_shape.shape[1]
                           * out_shape.dtype.itemsize
                           + weight_bytes),
    )

    out = pl.pallas_call(
        kernel,
        out_shape=out_shape,
        grid_spec=pltpu.PrefetchScalarGridSpec(
            num_scalar_prefetch=0,
            grid=(grid_b,),
            in_specs=[
                pl.BlockSpec((bt, F), lambda i: (i, 0)),   # x tile (streams)
                const_block(prep["w1t"]), const_block(prep["b1"]),
                const_block(prep["w2t"]), const_block(prep["b2"]),
                const_block(prep["w3t"]), const_block(prep["b3"]),
                const_block(prep["w4t"]), const_block(prep["b4"]),
            ],
            out_specs=out_spec,
        ),
        compiler_params=pltpu.CompilerParams(
            dimension_semantics=("parallel",)),   # batch axis -> both TCs on v7x
        cost_estimate=cost,
    )(x, prep["w1t"], prep["b1"], prep["w2t"], prep["b2"],
      prep["w3t"], prep["b3"], prep["w4t"], prep["b4"])

    return out[:B] if B_pad != B else out


def brain_forward(x, prep, *, batch_tile=None, activation_dtype=jnp.float32):
    """Brain.forward: x (B, F) float32, prep from prepare_params -> (B, A) f32."""
    return _run(x, prep, batch_tile=batch_tile,
                activation_dtype=activation_dtype)


def brain_act(obs, prep, *, activation_dtype=jnp.float32):
    """Brain.act: greedy action for one observation, argmax fused in-kernel."""
    x = jnp.asarray(obs, jnp.float32).reshape(1, -1)
    a = _run(x, prep, want_argmax=True, activation_dtype=activation_dtype)
    return int(a[0, 0])


# ----------------------------------------------------------------------------
# Reference + init
# ----------------------------------------------------------------------------
def init_params(key, in_features, n_actions):
    """Deterministic PyTorch-Linear-style (uniform +/- 1/sqrt(fan_in)) init."""
    dims = [(64, in_features), (128, 64), (64, 128), (n_actions, 64)]
    params = {}
    for idx, (out_d, in_d) in enumerate(dims, start=1):
        key, kw, kb = jax.random.split(key, 3)
        bound = 1.0 / np.sqrt(in_d)
        params[f"w{idx}"] = jax.random.uniform(
            kw, (out_d, in_d), jnp.float32, -bound, bound)
        params[f"b{idx}"] = jax.random.uniform(
            kb, (out_d,), jnp.float32, -bound, bound)
    return params


def brain_forward_ref(x, params, compute_dtype=jnp.bfloat16):
    """Pure-JAX reference applying the same operand casts as the kernel."""
    cdt = compute_dtype
    h = x.astype(cdt)
    h = jnp.tanh(jnp.dot(h, params["w1"].T.astype(cdt),
                         preferred_element_type=jnp.float32) + params["b1"])
    h = jnp.tanh(jnp.dot(h.astype(cdt), params["w2"].T.astype(cdt),
                         preferred_element_type=jnp.float32) + params["b2"])
    h = jnp.tanh(jnp.dot(h.astype(cdt), params["w3"].T.astype(cdt),
                         preferred_element_type=jnp.float32) + params["b3"])
    return (jnp.dot(h.astype(cdt), params["w4"].T.astype(cdt),
                    preferred_element_type=jnp.float32) + params["b4"])


# ----------------------------------------------------------------------------
# Main
# ----------------------------------------------------------------------------
if __name__ == "__main__":
    key = jax.random.PRNGKey(0)
    k_param, k_x1, k_x2 = jax.random.split(key, 3)

    # Synthetic env: observation_space.shape = (16,), action_space.n = 4
    in_features = 16
    n_actions = 4

    params = init_params(k_param, in_features, n_actions)
    prep_bf16 = prepare_params(params)                    # default: bf16 MXU operands
    prep_f32 = prepare_params(params, jnp.float32)        # strict-parity path

    # Case 1: small batch (single grid step, tile == full batch).
    x1 = jax.random.normal(k_x1, (8, in_features), jnp.float32)
    q1 = jax.block_until_ready(brain_forward(x1, prep_bf16))
    np.testing.assert_allclose(np.asarray(q1),
                               np.asarray(brain_forward_ref(x1, params)),
                               rtol=2e-2, atol=2e-2)

    # Case 1b: f32 compute path (strict parity with an f32 reference).
    q1_f32 = jax.block_until_ready(brain_forward(x1, prep_f32))
    np.testing.assert_allclose(
        np.asarray(q1_f32),
        np.asarray(brain_forward_ref(x1, params, jnp.float32)),
        rtol=2e-3, atol=2e-3)

    # Case 2: batch not a multiple of the tile (padding + grid > 1).
    x2 = jax.random.normal(k_x2, (20, in_features), jnp.float32)
    q2 = jax.block_until_ready(brain_forward(x2, prep_bf16, batch_tile=8))
    np.testing.assert_allclose(np.asarray(q2),
                               np.asarray(brain_forward_ref(x2, params)),
                               rtol=2e-2, atol=2e-2)

    # Case 3: Brain.act equivalent -- argmax fused in the kernel epilogue.
    action = brain_act(np.asarray(x1[0]), prep_bf16)
    assert action == int(jnp.argmax(q1[0])), (action, int(jnp.argmax(q1[0])))

    print("KERNEL_OK")
</pallas_src>

<mosaic_0001>
module attributes {stable_mosaic.version = 11 : i64} {
  func.func @_mlp_kernel(%arg0: i32, %arg1: memref<8x16xf32, #tpu.memory_space<vmem>>, %arg2: memref<16x64xbf16, #tpu.memory_space<vmem>>, %arg3: memref<1x64xf32, #tpu.memory_space<vmem>>, %arg4: memref<64x128xbf16, #tpu.memory_space<vmem>>, %arg5: memref<1x128xf32, #tpu.memory_space<vmem>>, %arg6: memref<128x64xbf16, #tpu.memory_space<vmem>>, %arg7: memref<1x64xf32, #tpu.memory_space<vmem>>, %arg8: memref<64x4xbf16, #tpu.memory_space<vmem>>, %arg9: memref<1x4xf32, #tpu.memory_space<vmem>>, %arg10: memref<8x4xf32, #tpu.memory_space<vmem>>) attributes {dimension_semantics = [#tpu.dimension_semantics<parallel>], iteration_bounds = array<i64: 1>, scalar_prefetch = 0 : i64, scratch_operands = 0 : i64, tpu.core_type = #tpu.core_type<tc>, window_params = [{transform_indices = @transform_0, window_bounds = array<i64: 8, 16>}, {pipeline_mode = #tpu.pipeline_mode<synchronous>, transform_indices = @transform_1, window_bounds = array<i64: 16, 64>}, {pipeline_mode = #tpu.pipeline_mode<synchronous>, transform_indices = @transform_2, window_bounds = array<i64: 1, 64>}, {pipeline_mode = #tpu.pipeline_mode<synchronous>, transform_indices = @transform_3, window_bounds = array<i64: 64, 128>}, {pipeline_mode = #tpu.pipeline_mode<synchronous>, transform_indices = @transform_4, window_bounds = array<i64: 1, 128>}, {pipeline_mode = #tpu.pipeline_mode<synchronous>, transform_indices = @transform_5, window_bounds = array<i64: 128, 64>}, {pipeline_mode = #tpu.pipeline_mode<synchronous>, transform_indices = @transform_6, window_bounds = array<i64: 1, 64>}, {pipeline_mode = #tpu.pipeline_mode<synchronous>, transform_indices = @transform_7, window_bounds = array<i64: 64, 4>}, {pipeline_mode = #tpu.pipeline_mode<synchronous>, transform_indices = @transform_8, window_bounds = array<i64: 1, 4>}, {transform_indices = @transform_9, window_bounds = array<i64: 8, 4>}]} {
    %c0 = arith.constant 0 : index
    %c0_0 = arith.constant 0 : index
    %0 = vector.load %arg1[%c0, %c0_0] : memref<8x16xf32, #tpu.memory_space<vmem>>, vector<8x16xf32>
    %1 = arith.truncf %0 : vector<8x16xf32> to vector<8x16xbf16>
    %c0_1 = arith.constant 0 : index
    %c0_2 = arith.constant 0 : index
    %2 = vector.load %arg2[%c0_1, %c0_2] : memref<16x64xbf16, #tpu.memory_space<vmem>>, vector<16x64xbf16>
    %cst = arith.constant dense<0.000000e+00> : vector<8x64xf32>
    %3 = tpu.matmul %1, %2, %cst {dimension_numbers = #tpu.dot_dimension_numbers<[1], [0], [0], [1], [0, 0, 1, 1], [], []>} : vector<8x16xbf16>, vector<16x64xbf16>, vector<8x64xf32> -> vector<8x64xf32>
    %c0_3 = arith.constant 0 : index
    %c0_4 = arith.constant 0 : index
    %4 = vector.load %arg3[%c0_3, %c0_4] : memref<1x64xf32, #tpu.memory_space<vmem>>, vector<1x64xf32>
    %5 = vector.broadcast %4 : vector<1x64xf32> to vector<8x64xf32>
    %6 = arith.addf %3, %5 : vector<8x64xf32>
    %7 = math.tanh %6 : vector<8x64xf32>
    %8 = arith.truncf %7 : vector<8x64xf32> to vector<8x64xbf16>
    %c0_5 = arith.constant 0 : index
    %c0_6 = arith.constant 0 : index
    %9 = vector.load %arg4[%c0_5, %c0_6] : memref<64x128xbf16, #tpu.memory_space<vmem>>, vector<64x128xbf16>
    %cst_7 = arith.constant dense<0.000000e+00> : vector<8x128xf32>
    %10 = tpu.matmul %8, %9, %cst_7 {dimension_numbers = #tpu.dot_dimension_numbers<[1], [0], [0], [1], [0, 0, 1, 1], [], []>} : vector<8x64xbf16>, vector<64x128xbf16>, vector<8x128xf32> -> vector<8x128xf32>
    %c0_8 = arith.constant 0 : index
    %c0_9 = arith.constant 0 : index
    %11 = vector.load %arg5[%c0_8, %c0_9] : memref<1x128xf32, #tpu.memory_space<vmem>>, vector<1x128xf32>
    %12 = vector.broadcast %11 : vector<1x128xf32> to vector<8x128xf32>
    %13 = arith.addf %10, %12 : vector<8x128xf32>
    %14 = math.tanh %13 : vector<8x128xf32>
    %15 = arith.truncf %14 : vector<8x128xf32> to vector<8x128xbf16>
    %c0_10 = arith.constant 0 : index
    %c0_11 = arith.constant 0 : index
    %16 = vector.load %arg6[%c0_10, %c0_11] : memref<128x64xbf16, #tpu.memory_space<vmem>>, vector<128x64xbf16>
    %cst_12 = arith.constant dense<0.000000e+00> : vector<8x64xf32>
    %17 = tpu.matmul %15, %16, %cst_12 {dimension_numbers = #tpu.dot_dimension_numbers<[1], [0], [0], [1], [0, 0, 1, 1], [], []>} : vector<8x128xbf16>, vector<128x64xbf16>, vector<8x64xf32> -> vector<8x64xf32>
    %c0_13 = arith.constant 0 : index
    %c0_14 = arith.constant 0 : index
    %18 = vector.load %arg7[%c0_13, %c0_14] : memref<1x64xf32, #tpu.memory_space<vmem>>, vector<1x64xf32>
    %19 = vector.broadcast %18 : vector<1x64xf32> to vector<8x64xf32>
    %20 = arith.addf %17, %19 : vector<8x64xf32>
    %21 = math.tanh %20 : vector<8x64xf32>
    %22 = arith.truncf %21 : vector<8x64xf32> to vector<8x64xbf16>
    %c0_15 = arith.constant 0 : index
    %c0_16 = arith.constant 0 : index
    %23 = vector.load %arg8[%c0_15, %c0_16] : memref<64x4xbf16, #tpu.memory_space<vmem>>, vector<64x4xbf16>
    %cst_17 = arith.constant dense<0.000000e+00> : vector<8x4xf32>
    %24 = tpu.matmul %22, %23, %cst_17 {dimension_numbers = #tpu.dot_dimension_numbers<[1], [0], [0], [1], [0, 0, 1, 1], [], []>} : vector<8x64xbf16>, vector<64x4xbf16>, vector<8x4xf32> -> vector<8x4xf32>
    %c0_18 = arith.constant 0 : index
    %c0_19 = arith.constant 0 : index
    %25 = vector.load %arg9[%c0_18, %c0_19] : memref<1x4xf32, #tpu.memory_space<vmem>>, vector<1x4xf32>
    %26 = vector.broadcast %25 : vector<1x4xf32> to vector<8x4xf32>
    %27 = arith.addf %24, %26 : vector<8x4xf32>
    %c0_20 = arith.constant 0 : index
    %c0_21 = arith.constant 0 : index
    %28 = vector.load %arg10[%c0_20, %c0_21] : memref<8x4xf32, #tpu.memory_space<vmem>>, vector<8x4xf32>
    tpu.vector_store %arg10[%c0_20, %c0_21], %27 {strides = array<i32>} : memref<8x4xf32, #tpu.memory_space<vmem>>, vector<8x4xf32>,
    return
  }
  func.func @transform_0(%arg0: i32) -> (i32, i32) {
    %c0_i32 = arith.constant 0 : i32
    %c0_i32_0 = arith.constant 0 : i32
    return %arg0, %c0_i32 : i32, i32
  }
  func.func @transform_1(%arg0: i32) -> (i32, i32) {
    %c0_i32 = arith.constant 0 : i32
    %c0_i32_0 = arith.constant 0 : i32
    %c0_i32_1 = arith.constant 0 : i32
    return %c0_i32, %c0_i32_0 : i32, i32
  }
  func.func @transform_2(%arg0: i32) -> (i32, i32) {
    %c0_i32 = arith.constant 0 : i32
    %c0_i32_0 = arith.constant 0 : i32
    %c0_i32_1 = arith.constant 0 : i32
    return %c0_i32, %c0_i32_0 : i32, i32
  }
  func.func @transform_3(%arg0: i32) -> (i32, i32) {
    %c0_i32 = arith.constant 0 : i32
    %c0_i32_0 = arith.constant 0 : i32
    %c0_i32_1 = arith.constant 0 : i32
    return %c0_i32, %c0_i32_0 : i32, i32
  }
  func.func @transform_4(%arg0: i32) -> (i32, i32) {
    %c0_i32 = arith.constant 0 : i32
    %c0_i32_0 = arith.constant 0 : i32
    %c0_i32_1 = arith.constant 0 : i32
    return %c0_i32, %c0_i32_0 : i32, i32
  }
  func.func @transform_5(%arg0: i32) -> (i32, i32) {
    %c0_i32 = arith.constant 0 : i32
    %c0_i32_0 = arith.constant 0 : i32
    %c0_i32_1 = arith.constant 0 : i32
    return %c0_i32, %c0_i32_0 : i32, i32
  }
  func.func @transform_6(%arg0: i32) -> (i32, i32) {
    %c0_i32 = arith.constant 0 : i32
    %c0_i32_0 = arith.constant 0 : i32
    %c0_i32_1 = arith.constant 0 : i32
    return %c0_i32, %c0_i32_0 : i32, i32
  }
  func.func @transform_7(%arg0: i32) -> (i32, i32) {
    %c0_i32 = arith.constant 0 : i32
    %c0_i32_0 = arith.constant 0 : i32
    %c0_i32_1 = arith.constant 0 : i32
    return %c0_i32, %c0_i32_0 : i32, i32
  }
  func.func @transform_8(%arg0: i32) -> (i32, i32) {
    %c0_i32 = arith.constant 0 : i32
    %c0_i32_0 = arith.constant 0 : i32
    %c0_i32_1 = arith.constant 0 : i32
    return %c0_i32, %c0_i32_0 : i32, i32
  }
  func.func @transform_9(%arg0: i32) -> (i32, i32) {
    %c0_i32 = arith.constant 0 : i32
    %c0_i32_0 = arith.constant 0 : i32
    return %arg0, %c0_i32 : i32, i32
  }
}

</mosaic_0001>

<bundles_post_ra>
// kernel: tpu_custom_call.1
= control target key start
LH: loop header
LB: loop body
LE: loop exit
PB: predicated region body
PF: predicated region fallthrough
CT: control target
= control target key end

     0   :  { %vm47_vm0 = vcmask 130048   ;;  %vm102_vm1 = vcmask 523264   ;;  %vm256_vm2 = vcmask 31744   ;;  %s481_s1 = inlined_call_operand.vmem [shape: bf16[16,64], index: 1, kind: input, shape index: {}]   ;;  %s482_s0 = inlined_call_operand.vmem [shape: f32[8,16], index: 0, kind: input, shape index: {}]   ;;  %s483_s3 = inlined_call_operand.vmem [shape: bf16[64,128], index: 3, kind: input, shape index: {}]   ;;  %s484_s2 = inlined_call_operand.vmem [shape: f32[1,64], index: 2, kind: input, shape index: {}]   ;;  %s485_s4 = inlined_call_operand.vmem [shape: f32[1,128], index: 4, kind: input, shape index: {}]   ;;  %s486_s5 = inlined_call_operand.vmem [shape: bf16[128,64], index: 5, kind: input, shape index: {}]   ;;  %s487_s6 = inlined_call_operand.vmem [shape: f32[1,64], index: 6, kind: input, shape index: {}]   ;;  %s488_s7 = inlined_call_operand.vmem [shape: bf16[64,4], index: 7, kind: input, shape index: {}]   ;;  %s489_s8 = inlined_call_operand.vmem [shape: f32[1,4], index: 8, kind: input, shape index: {}]   ;;  %s490_s9 = inlined_call_operand.vmem [shape: f32[8,4], index: 9, kind: output, shape index: {}]  }
   0x1   :  { %v333_v0 = vld [vmem:[%s481_s1] sm:$0xff]  ;;  %v337_v2 = vld [vmem:[%s483_s3 + $0x18] sm:$0xff]  ;;  %v336_v4 = vld [vmem:[%s483_s3 + $0x10] sm:$0xff] }
   0x2   :  { %v33_v1 = vld [vmem:[%s482_s0] sm:$0xff]  ;;  %58 = vmatpush.bf16.msra.mxu0 %v333_v0  ;;  %110 = vmatpush.bf16.msra.mxu1 %v337_v2  ;;  %v335_v5 = vld [vmem:[%s483_s3 + $0x8] sm:$0xff]  ;;  %v345_v7 = vld [vmem:[%s486_s5 + $0x38] sm:$0xff] }
   0x3   :  { %v34_v3 = vpack.c.bf16 %v33_v1, %v33_v1  ;;  %v334_v6 = vld [vmem:[%s483_s3] sm:$0xff]  ;;  %189 = vmatpush.bf16.msra.mxu2 %v345_v7  ;;  %v344_v8 = vld [vmem:[%s486_s5 + $0x30] sm:$0xff]  ;;  %v343_v9 = vld [vmem:[%s486_s5 + $0x28] sm:$0xff] }
   0x4   :  { %v342_v10 = vld [vmem:[%s486_s5 + $0x20] sm:$0xff]  ;;  %v341_v11 = vld [vmem:[%s486_s5 + $0x18] sm:$0xff]  ;;  %v340_v18 = vld [vmem:[%s486_s5 + $0x10] sm:$0xff] }
   0x5   :  { %266 = vmatmul.msk.bf16.vlgmr.msra.gmra.mxu0 %vm47_vm0, %v34_v3  ;;  %v350_v12 = vld [vmem:[%s484_s2] ss:$0 sm:$0xff]  ;;  %v339_v19 = vld [vmem:[%s486_s5 + $0x8] sm:$0xff]  ;;  %v349_v21 = vld [vmem:[%s488_s7 + $0x18] sm:$0xff] }
   0x6   :  { %111 = vmatpush.bf16.msra.mxu1 %v336_v4  ;;  %v338_v20 = vld [vmem:[%s486_s5] sm:$0xff]  ;;  %247 = vmatpush.bf16.msra.mxu3 %v349_v21  ;;  %v348_v28 = vld [vmem:[%s488_s7 + $0x10] sm:$0xff]  ;;  %v347_v29 = vld [vmem:[%s488_s7 + $0x8] sm:$0xff] }
   0x7   :  { %190 = vmatpush.bf16.msra.mxu2 %v344_v8  ;;  %v351_v22 = vld [vmem:[%s485_s4] ss:$0 sm:$0xff] }
   0x8   :  { %v346_v30 = vld [vmem:[%s488_s7] sm:$0xff] }
   0x9   :  { %v352_v31 = vld [vmem:[%s487_s6] ss:$0 sm:$0xff] }
   0xa   :  { %112 = vmatpush.bf16.msra.mxu1 %v335_v5  ;;  %248 = vmatpush.bf16.msra.mxu3 %v348_v28  ;;  %v353_v37 = vld [vmem:[%s489_s8] ss:$0 sm:$0xff] }
   0xb   :  { %191 = vmatpush.bf16.msra.mxu2 %v343_v9 }
   0xe   :  { %113 = vmatpush.bf16.msra.mxu1 %v334_v6  ;;  %249 = vmatpush.bf16.msra.mxu3 %v347_v29 }
   0xf   :  { %192 = vmatpush.bf16.msra.mxu2 %v342_v10 }
  0x12   :  { %250 = vmatpush.bf16.msra.mxu3 %v346_v30 }
  0x13   :  { %193 = vmatpush.bf16.msra.mxu2 %v341_v11 }
  0x17   :  { %194 = vmatpush.bf16.msra.mxu2 %v340_v18 }
  0x1b   :  { %195 = vmatpush.bf16.msra.mxu2 %v339_v19 }
  0x1f   :  { %196 = vmatpush.bf16.msra.mxu2 %v338_v20 }
  0x82   :  { %v60_v13 = vpop.f32.mrf.mxu0 }
  0x83   :  { %v61_v14 = vadd.f32 %v350_v12, %v60_v13 }
  0x85   :  { %354 = vtanh.f32 %v61_v14 }
  0x8a   :  { %v62_v15 = vpop.f32.mrf.mxu0 }
  0x8b   :  { %v355_v16 = vpop.eup %354 }
  0x8c   :  { %v65_v17 = vpack.c.bf16 %v355_v16, %v355_v16 }
  0x8e   :  { %283 = vmatmul.msk.bf16.vlgmr.msra.gmra.mxu1 %vm102_vm1, %v65_v17 }
 0x10b   :  { %v115_v23 = vpop.f32.mrf.mxu1 }
 0x10c   :  { %v116_v24 = vadd.f32 %v351_v22, %v115_v23 }
 0x10e   :  { %356 = vtanh.f32 %v116_v24 }
 0x113   :  { %v117_v25 = vpop.f32.mrf.mxu1 }
 0x114   :  { %v357_v26 = vpop.eup %356 }
 0x115   :  { %v120_v27 = vpack.c.bf16 %v357_v26, %v357_v26 }
 0x117   :  { %197 = vmatmul.bf16.vlgmr.msra.gmra.mxu2 %v120_v27 }
 0x19a   :  { %v198_v32 = vpop.f32.mrf.mxu2 }
 0x19b   :  { %v199_v33 = vadd.f32 %v352_v31, %v198_v32 }
 0x19d   :  { %358 = vtanh.f32 %v199_v33 }
 0x1a2   :  { %v200_v34 = vpop.f32.mrf.mxu2 }
 0x1a3   :  { %v359_v35 = vpop.eup %358 }
 0x1a4   :  { %v203_v36 = vpack.c.bf16 %v359_v35, %v359_v35 }
 0x1a6   :  { %332 = vmatmul.msk.bf16.vlgmr.msra.gmra.mxu3 %vm102_vm1, %v203_v36 }
 0x229   :  { %v252_v38 = vpop.f32.mrf.mxu3 }
 0x22a   :  { %v253_v39 = vadd.f32 %v353_v37, %v252_v38 }
 0x22c   :  { %257 = vst.msk [vmem:[%s490_s9] sm:$0xff] %vm256_vm2, %v253_v39 }
 0x231   :  { %v254_v40 = vpop.f32.mrf.mxu3 }

</bundles_post_ra>
